<compile_context>
chip_gen: v7x
topology: tpu7x:2x2x1
jax: 0.10.0
libtpu: 0.0.40
codegen_flags: <defaults>
</compile_context>

<pallas_src>
import functools

import jax
import jax.numpy as jnp
from jax import lax
from jax.experimental import pallas as pl
from jax.experimental.pallas import tpu as pltpu


def _round_up(x, m):
    return (x + m - 1) // m * m


def _accuracy_kernel(yp_ref, tp_ref, *, C, HW, R, needs_mask):
    # yp_ref: (1, C, R, 128) logits (native dtype)
    # tp_ref: (1, 8, 128) int32 per-sample true-positive partial counts,
    #         resident across the spatial-tile grid axis.
    t = pl.program_id(1)

    @pl.when(t == 0)
    def _init():
        tp_ref[...] = jnp.zeros_like(tp_ref)

    if R % 8 == 0:
        n_groups = R // 8
        rows = 8
    else:  # only when L < 8: single partial-height group
        n_groups = 1
        rows = R

    if needs_mask:
        # pixel offset of each (sublane, lane) slot within a group (loop-invariant)
        pix = (lax.broadcasted_iota(jnp.int32, (rows, 128), 0) * 128
               + lax.broadcasted_iota(jnp.int32, (rows, 128), 1))

    def group_count(g):
        x = yp_ref[0, :, pl.ds(g * rows, rows), :]          # (C, rows, 128)
        if C > 1:
            m = jnp.max(x, axis=0)                          # (rows, 128), pure VPU
            x0 = x[0]
            x1 = x[1]
            # first-occurrence argmax: pred==0 iff class0 hits the max,
            # pred==1 iff class1 hits the max and class0 does not.
            cnt = jnp.where(x0 == m, jnp.int32(C - 1),
                            jnp.where((x1 == m) & (x0 != m),
                                      jnp.int32(1), jnp.int32(0)))
        else:
            p = jnp.round(jax.nn.sigmoid(x[0].astype(jnp.float32)))
            cnt = jnp.where(p == jnp.float32(1.0), jnp.int32(1), jnp.int32(0))
        if needs_mask:
            base = (t * R + g * rows) * 128
            cnt = jnp.where(base + pix < HW, cnt, jnp.int32(0))
        return cnt                                           # (rows, 128) int32

    acc = group_count(0)
    for g in range(1, n_groups):
        acc = acc + group_count(g)

    if R % 8 == 0:
        tp_ref[0] = tp_ref[0] + acc
    else:
        tp_ref[0, 0:R, :] = tp_ref[0, 0:R, :] + acc


def accuracy(y_pred, y):
    """Pallas implementation of Accuracy.forward. Returns a float32 scalar."""
    del y  # exact metric value is independent of (valid) labels -- see header note
    N, C, H, W = y_pred.shape
    HW = H * W

    # Flatten spatial dims and lay pixels out as (L, 128). The reshape is free
    # when HW is a multiple of 128; otherwise pad (rare fallback, masked in-kernel).
    HWp = _round_up(HW, 128)
    yp = y_pred.reshape(N, C, HW)
    if HWp != HW:
        yp = jnp.pad(yp, ((0, 0), (0, 0), (0, HWp - HW)))
    L = HWp // 128
    yp = yp.reshape(N, C, L, 128)          # native dtype -- no f32 upcast in HBM

    # Tile rows: target ~1 MiB of logits per grid step (double-buffered stays far
    # below scoped VMEM on v5e/v6e/v7x); cap at 256 rows to bound vreg pressure.
    itemsize = jnp.dtype(y_pred.dtype).itemsize
    target_bytes = 1 << 20
    rows = max(8, min(256, (target_bytes // (C * 128 * itemsize)) // 8 * 8))
    R = L if L < 8 else min(rows, (L // 8) * 8)
    num_tiles = pl.cdiv(L, R)
    needs_mask = num_tiles * R * 128 > HW   # padded pixels or partial last tile

    tp = pl.pallas_call(
        functools.partial(_accuracy_kernel, C=C, HW=HW, R=R, needs_mask=needs_mask),
        out_shape=jax.ShapeDtypeStruct((N, 8, 128), jnp.int32),
        grid_spec=pltpu.PrefetchScalarGridSpec(
            num_scalar_prefetch=0,
            grid=(N, num_tiles),
            in_specs=[pl.BlockSpec((1, C, R, 128), lambda n, t: (n, 0, t, 0))],
            out_specs=pl.BlockSpec((1, 8, 128), lambda n, t: (n, 0, 0)),
        ),
        compiler_params=pltpu.CompilerParams(
            dimension_semantics=("parallel", "arbitrary"),
            vmem_limit_bytes=32 * 1024 * 1024,
        ),
    )(yp)

    numel = N * C * H * W
    # int32 partials are exact; single cross-lane reduce happens here, outside the kernel.
    return jnp.sum(tp).astype(jnp.float32) / jnp.float32(numel)


def _accuracy_ref(y_pred, y):
    """Pure-JAX reference mirroring the torch code (uses the labels explicitly)."""
    N, C, H, W = y_pred.shape
    one_hot = jax.nn.one_hot(y[:, 0], C, dtype=jnp.float32).transpose(0, 3, 1, 2)
    if C > 1:
        probs = jax.nn.softmax(y_pred.astype(jnp.float32), axis=1)
        pred = jnp.argmax(probs, axis=1)[:, None].astype(jnp.float32)
    else:
        pred = jnp.round(jax.nn.sigmoid(y_pred.astype(jnp.float32)))
    tp = jnp.sum((one_hot == pred).astype(jnp.float32))
    return tp / jnp.float32(N * C * H * W)


if __name__ == "__main__":
    key = jax.random.PRNGKey(0)
    k1, k2 = jax.random.split(key)
    N, C, H, W = 2, 4, 16, 16

    y_pred = jax.random.normal(k1, (N, C, H, W), dtype=jnp.float32)
    y = jax.random.randint(k2, (N, 1, H, W), 0, C, dtype=jnp.int32)

    score = accuracy(y_pred, y)
    jax.block_until_ready(score)

    ref = _accuracy_ref(y_pred, y)
    assert abs(float(score) - float(ref)) < 1e-6, (float(score), float(ref))

    print("KERNEL_OK")
</pallas_src>

<mosaic_0001>
module attributes {stable_mosaic.version = 11 : i64} {
  func.func @_accuracy_kernel(%arg0: i32, %arg1: i32, %arg2: memref<1x4x2x128xf32, #tpu.memory_space<vmem>>, %arg3: memref<1x8x128xi32, #tpu.memory_space<vmem>>) attributes {dimension_semantics = [#tpu.dimension_semantics<parallel>, #tpu.dimension_semantics<arbitrary>], iteration_bounds = array<i64: 2, 1>, scalar_prefetch = 0 : i64, scratch_operands = 0 : i64, tpu.core_type = #tpu.core_type<tc>, window_params = [{transform_indices = @transform_0, window_bounds = array<i64: 1, 4, 2, 128>}, {transform_indices = @transform_1, window_bounds = array<i64: 1, 8, 128>}]} {
    %c0_i32 = arith.constant 0 : i32
    %0 = arith.cmpi eq, %arg1, %c0_i32 : i32
    %1 = arith.extui %0 : i1 to i32
    %c0_i32_0 = arith.constant 0 : i32
    %2 = arith.cmpi ne, %1, %c0_i32_0 : i32
    scf.if %2 {
      %c0_i32_11 = arith.constant 0 : i32
      %25 = vector.broadcast %c0_i32_11 : i32 to vector<1x8x128xi32>
      %c0_12 = arith.constant 0 : index
      %c0_13 = arith.constant 0 : index
      %c0_14 = arith.constant 0 : index
      %26 = vector.load %arg3[%c0_12, %c0_13, %c0_14] : memref<1x8x128xi32, #tpu.memory_space<vmem>>, vector<1x8x128xi32>
      tpu.vector_store %arg3[%c0_12, %c0_13, %c0_14], %25 {strides = array<i32>} : memref<1x8x128xi32, #tpu.memory_space<vmem>>, vector<1x8x128xi32>,
    } else {
    }
    %c0 = arith.constant 0 : index
    %c0_1 = arith.constant 0 : index
    %c0_2 = arith.constant 0 : index
    %c0_3 = arith.constant 0 : index
    %3 = vector.load %arg2[%c0, %c0_1, %c0_2, %c0_3] : memref<1x4x2x128xf32, #tpu.memory_space<vmem>>, vector<1x4x2x128xf32>
    %4 = vector.shape_cast %3 : vector<1x4x2x128xf32> to vector<4x2x128xf32>
    %cst = arith.constant dense<0xFF800000> : vector<2x128xf32>
    %5 = vector.multi_reduction <maximumf>, %4, %cst [0] : vector<4x2x128xf32> to vector<2x128xf32>
    %6 = vector.extract_strided_slice %4 {offsets = [0, 0, 0], sizes = [1, 2, 128], strides = [1, 1, 1]} : vector<4x2x128xf32> to vector<1x2x128xf32>
    %7 = vector.shape_cast %6 : vector<1x2x128xf32> to vector<2x128xf32>
    %8 = vector.extract_strided_slice %4 {offsets = [1, 0, 0], sizes = [1, 2, 128], strides = [1, 1, 1]} : vector<4x2x128xf32> to vector<1x2x128xf32>
    %9 = vector.shape_cast %8 : vector<1x2x128xf32> to vector<2x128xf32>
    %10 = arith.cmpf oeq, %7, %5 : vector<2x128xf32>
    %11 = arith.cmpf oeq, %9, %5 : vector<2x128xf32>
    %12 = arith.cmpf one, %7, %5 : vector<2x128xf32>
    %13 = arith.andi %11, %12 : vector<2x128xi1>
    %c1_i32 = arith.constant 1 : i32
    %c0_i32_4 = arith.constant 0 : i32
    %14 = vector.broadcast %c1_i32 : i32 to vector<2x128xi32>
    %15 = vector.broadcast %c0_i32_4 : i32 to vector<2x128xi32>
    %16 = arith.select %13, %14, %15 : vector<2x128xi1>, vector<2x128xi32>
    %c3_i32 = arith.constant 3 : i32
    %17 = vector.broadcast %c3_i32 : i32 to vector<2x128xi32>
    %18 = arith.select %10, %17, %16 : vector<2x128xi1>, vector<2x128xi32>
    %c0_5 = arith.constant 0 : index
    %c0_6 = arith.constant 0 : index
    %c0_7 = arith.constant 0 : index
    %19 = vector.load %arg3[%c0_5, %c0_6, %c0_7] : memref<1x8x128xi32, #tpu.memory_space<vmem>>, vector<1x2x128xi32>
    %20 = vector.shape_cast %19 : vector<1x2x128xi32> to vector<2x128xi32>
    %21 = arith.addi %20, %18 : vector<2x128xi32>
    %c0_8 = arith.constant 0 : index
    %c0_9 = arith.constant 0 : index
    %c0_10 = arith.constant 0 : index
    %22 = vector.load %arg3[%c0_8, %c0_9, %c0_10] : memref<1x8x128xi32, #tpu.memory_space<vmem>>, vector<1x2x128xi32>
    %23 = vector.shape_cast %22 : vector<1x2x128xi32> to vector<2x128xi32>
    %24 = vector.shape_cast %21 : vector<2x128xi32> to vector<1x2x128xi32>
    tpu.vector_store %arg3[%c0_8, %c0_9, %c0_10], %24 {strides = array<i32>} : memref<1x8x128xi32, #tpu.memory_space<vmem>>, vector<1x2x128xi32>,
    return
  }
  func.func @transform_0(%arg0: i32, %arg1: i32) -> (i32, i32, i32, i32) {
    %c0_i32 = arith.constant 0 : i32
    %c0_i32_0 = arith.constant 0 : i32
    %c0_i32_1 = arith.constant 0 : i32
    return %arg0, %c0_i32, %arg1, %c0_i32_0 : i32, i32, i32, i32
  }
  func.func @transform_1(%arg0: i32, %arg1: i32) -> (i32, i32, i32) {
    %c0_i32 = arith.constant 0 : i32
    %c0_i32_0 = arith.constant 0 : i32
    %c0_i32_1 = arith.constant 0 : i32
    return %arg0, %c0_i32, %c0_i32_0 : i32, i32, i32
  }
}

</mosaic_0001>

<bundles_post_ra>
// kernel: tpu_custom_call.1
= control target key start
LH: loop header
LB: loop body
LE: loop exit
PB: predicated region body
PF: predicated region fallthrough
CT: control target
= control target key end

     0   :  { %6 = vsyncpa [#allocation3], 0  ;;  %s652_s0 = inlined_call_operand.hbm [shape: f32[2,4,2,128], index: 0, kind: input, shape index: {}]   ;;  %s653_s1 = inlined_call_operand.hbm [shape: s32[2,8,128], index: 1, kind: output, shape index: {}]  }
   0x1   :  { %8 = vsyncpa [#allocation3 + $0x1], 0 }
   0x2   :  { %9 = vsyncpa [#allocation4], 0 }
   0x3   :  { %11 = vsyncpa [#allocation4 + $0x1], 0  ;;  %s479_s6 = smov 0   ;;  %s481_s7 = smov 0  }
   0x4   :  { %s483_s8 = smov 0   ;;  %s485_s9 = smov 0  }
   0x5   :  { %s487_s10 = smov 0   ;;  %s489_s11 = smov 0  }
   0x6 LB: > { %s270_s12 = sadd.s32 4294967295, %s462_s11   ;;  %s271_s13 = sadd.s32 4294967294, %s462_s11   ;;  %s462_s11 = sphi %s489_s11, %s17_s11   ;;  %s458_s10 = sphi %s487_s10, %s668_s10   ;;  %s454_s9 = sphi %s485_s9, %s667_s9   ;;  %s450_s8 = sphi %s483_s8, %s666_s8   ;;  %s446_s7 = sphi %s481_s7, %s665_s7   ;;  %s442_s6 = sphi %s479_s6, %s664_s6  }
   0x7   : > { %s29_s14 = sadd.s32 1, %s458_s10  ;;  %s38_s15 = sadd.s32 1, %s450_s8 }
   0x8   : > { %p31_p0 = scmp.ge.s32.totalorder %s29_s14, 2  ;;  %p45_p1 = scmp.ne.s32.totalorder %s450_s8, %s446_s7 }
   0x9   : > { %p46_p2 = scmp.eq.s32.totalorder %s462_s11, 0  ;;  %p51_p3 = scmp.ne.s32.totalorder %s446_s7, %s442_s6 }
   0xa   : > { %s670_s14 = smov (%p31_p0, %s29_s14), 0  ;;  %p52_p5 = scmp.eq.s32.totalorder %s270_s12, 0 }
   0xb   : > { %p520_p4 = por %p46_p2, %p45_p1  ;;  %s33_s17 = ssub.s32 %s458_s10, %s670_s14 }
   0xc   : > { %p75_p6 = scmp.eq.s32.totalorder %s270_s12, 1  ;;  %p36_p7 = scmp.eq.s32.totalorder %s33_s17, 0 }
   0xd   : > { %p526_p8 = por %p52_p5, %p51_p3  ;;  %p81_p10 = scmp.eq.s32.totalorder %s271_s13, 1 }
   0xe   : > { %p530_p9 = por %p75_p6, %p45_p1  ;;  %p297_p13 = scmp.lt.s32.totalorder %s462_s11, 2 }
   0xf   : > { %s535_s20 = scalar_select %p36_p7, %s450_s8, %s38_s15  }
  0x10   : > { %s657_s19 = scalar_select %p530_p9, 1, 0 }
  0x11   : > { %p537_p11 = por %p81_p10, %p51_p3  ;;  %s101_s22 = sand.u32 1, %s450_s8  }
  0x12   : > { %s274_s23 = sshll.u32 %s101_s22, 3  ;;  %s284_s24 = sshll.u32 %s458_s10, 7 }
  0x13   : > { %s658_s21 = scalar_select %p537_p11, 1, 0 }
  0x14   : > { %s548_s27 = scalar_lea.hbm %s652_s0, %s284_s24  ;;  %s105_s28 = scalar_lea.vmem [#allocation2], %s274_s23 }
  0x15   : > { %s113_s29 = sshll.u32 %s105_s28, 4  ;;  %p554_p0 = pnand %p297_p13, %p520_p4  ;;  %s550_s29 = int_to_ptr.vmem [resolvable:$true] %s113_s29 }
  0x16   : > { %s559_s2 = scalar_lea.sflag [#allocation3], %s101_s22  ;;  %s350_s3 = scalar_lea.hbm %s548_s27, 128 }
  0x17   : > { %p351_p2 = scmp.ne.s32.totalorder %s548_s27, %s350_s3  ;;  %p352_p3 = pneg %p554_p0 }
  0x18   : > { %s355_s12 = scalar_lea.hbm %s652_s0, 256  ;;  %p356_p4 = scmp.lt.u32.totalorder %s548_s27, %s652_s0 }
  0x19   : > { %p353_p5 = pnand %p352_p3, %p351_p2  ;;  %p357_p7 = scmp.lt.u32.totalorder %s355_s12, %s350_s3 }
  0x1a   : > { %p359_p13 = scmp.lt.u32.totalorder %s350_s3, %s548_s27 }
  0x1b   : > { %p354_p6 = pneg %p353_p5  ;;  %p358_p10 = por %p357_p7, %p356_p4 }
  0x1d   : > { %p360_p12 = por %p359_p13, %p358_p10 }
  0x1f   : > { %p361_p1 = pnand %p360_p12, %p354_p6 }
  0x21   : > { %364 = shalt.err (!%p361_p1)
}
  0x22   : > { %s365_s16 = scalar_lea.vmem %s550_s29, 128  ;;  %s464_s17 = smov [#allocation2]  }
  0x23   : > { %p366_p2 = scmp.ne.s32.totalorder %s550_s29, %s365_s16  ;;  %s370_s22 = sshll.u32 %s464_s17, 4  ;;  %s371_s22 = int_to_ptr.vmem [resolvable:$false] %s370_s22 }
  0x24   : > { %s372_s23 = scalar_lea.vmem %s371_s22, 256  ;;  %p373_p9 = scmp.lt.s32.totalorder %s550_s29, %s371_s22 }
  0x25   : > { %p368_p5 = pnand %p366_p2, %p352_p3  ;;  %p374_p4 = scmp.lt.s32.totalorder %s372_s23, %s365_s16 }
  0x27   : > { %p369_p11 = pneg %p368_p5  ;;  %p375_p7 = por %p374_p4, %p373_p9 }
  0x29   : > { %p376_p10 = pnand %p375_p7, %p369_p11 }
  0x2b   : > { %379 = shalt.err (!%p376_p10)
}
  0x2c   : > { %s465_s24 = smov 32   ;;  %s466_s25 = smov 2  }
  0x2d   : > { %292 = dma.hbm_to_vmem [thread:$0]  (!%p554_p0), %s548_s27, 128, %s550_s29, %s559_s2, %s465_s24, %s465_s24, %s466_s25  }
  0x2e   : > { %p121_p12 = scmp.lt.s32.totalorder %s462_s11, 3  ;;  %p660_p1 = scmp.ge.s32.totalorder %s462_s11, 1 }
  0x30   : > { %p122_p3 = pnand %p660_p1, %p121_p12 }
  0x31   : > { %s591_s26 = sand.u32 (!%p122_p3), 1, %s446_s7  }
  0x32   : > { %125 = sbr.rel (%p122_p3) target bundleno = 85 (0x55), region = 24  ;;  %s278_s28 = sshll.u32 (!%p122_p3), %s591_s26, 3 }
  0x33   : > { %s128_s3 = scalar_lea.sflag (!%p122_p3), [#allocation3], %s591_s26  ;;  %s131_s4 = scalar_lea.vmem (!%p122_p3), [#allocation2], %s278_s28 }
  0x39   : > { %433 = dma.done.wait (%p526_p8), %s128_s3, 128  }
  0x3a   : > { %435 = vsyncadd (%p526_p8), %s128_s3, 4294967168  ;;  %s149_s30 = scalar_lea.vmem [#allocation5], %s278_s28  ;;  %v467_v0 = vmov 0   ;;  %vm159_vm0 = vcmask 1041408   ;;  %v155_v1 = vld [vmem:[%s131_s4] sm:$0x3] }
  0x3b   : > { %154 = vst [vmem:[%s149_s30] sm:$0xff] %v467_v0  ;;  %v156_v2 = vld [vmem:[%s131_s4 + $0x2] sm:$0x3]  ;;  %v157_v3 = vld [vmem:[%s131_s4 + $0x4] sm:$0x3]  ;;  %v158_v4 = vld [vmem:[%s131_s4 + $0x6] sm:$0x3] }
  0x3c   : > { %v160_v5 = vsel %vm159_vm0, %v155_v1, -inf  ;;  %v161_v6 = vsel %vm159_vm0, %v156_v2, -inf  ;;  %v162_v7 = vsel %vm159_vm0, %v157_v3, -inf  ;;  %v163_v8 = vsel %vm159_vm0, %v158_v4, -inf  ;;  %s190_s18 = sshll.u32 %s149_s30, 4  ;;  %s281_s27 = sshll.u32 %s454_s9, 7  ;;  %s600_s18 = int_to_ptr.vmem [resolvable:$true] %s190_s18 }
  0x3d   : > { %v164_v9 = vmax.f32 %v160_v5, %v161_v6  ;;  %v165_v10 = vmax.f32 %v162_v7, %v163_v8  ;;  %s605_s5 = scalar_lea.hbm %s653_s1, %s281_s27  ;;  %s177_s12 = scalar_lea.sflag [#allocation4], %s591_s26 }
  0x3e   : > { %s380_s13 = scalar_lea.vmem %s600_s18, 128  ;;  %p661_p9 = scmp.ne.s32.totalorder %s657_s19, 0 }
  0x3f   : > { %v166_v11 = vmax.f32 %v164_v9, %v165_v10  ;;  %p381_p8 = scmp.ne.s32.totalorder %s600_s18, %s380_s13  ;;  %s468_s9 = smov [#allocation5]  }
  0x40   : > { %s384_s15 = sshll.u32 %s468_s9, 4  ;;  %s385_s15 = int_to_ptr.vmem [resolvable:$false] %s384_s15 }
  0x41   : > { %vm167_vm1 = vcmp.eq.f32.partialorder %v155_v1, %v166_v11  ;;  %vm168_vm2 = vcmp.eq.f32.partialorder %v156_v2, %v166_v11  ;;  %vm169_vm3 = vcmp.ne.f32.partialorder %v155_v1, %v166_v11  ;;  %p382_p11 = pnand %p381_p8, %p661_p9  ;;  %s386_s16 = scalar_lea.vmem %s385_s15, 256 }
  0x42   : > { %vm170_vm4 = vmand %vm168_vm2, %vm169_vm3  ;;  %v173_v12 = vld [vmem:[%s149_s30] sm:$0x3]  ;;  %p387_p6 = scmp.lt.s32.totalorder %s600_s18, %s385_s15  ;;  %p388_p13 = scmp.lt.s32.totalorder %s386_s16, %s380_s13 }
  0x43   : > { %v171_v13 = vsel %vm170_vm4, 1, %v467_v0  ;;  %p383_p0 = pneg %p382_p11 }
  0x44   : > { %v172_v14 = vsel %vm167_vm1, 3, %v171_v13  ;;  %p389_p2 = por %p388_p13, %p387_p6 }
  0x45   : > { %v174_v15 = vadd.s32 %v173_v12, %v172_v14 }
  0x46   : > { %p390_p5 = pnand %p389_p2, %p383_p0 }
  0x47   : > { %175 = vst [vmem:[%s149_s30] sm:$0x3] %v174_v15 }
  0x48   : > { %393 = shalt.err (!%p390_p5)
}
  0x49   : > { %s394_s17 = scalar_lea.hbm %s605_s5, 128  ;;  %s398_s24 = scalar_lea.hbm %s653_s1, 256 }
  0x4a   : > { %p395_p4 = scmp.ne.s32.totalorder %s605_s5, %s394_s17  ;;  %p399_p12 = scmp.lt.u32.totalorder %s605_s5, %s653_s1 }
  0x4b   : > { %p400_p1 = scmp.lt.u32.totalorder %s398_s24, %s394_s17  ;;  %p402_p8 = scmp.lt.u32.totalorder %s394_s17, %s605_s5 }
  0x4c   : > { %p396_p7 = pnand %p395_p4, %p661_p9 }
  0x4d   : > { %p401_p3 = por %p400_p1, %p399_p12 }
  0x4e   : > { %p397_p10 = pneg %p396_p7 }
  0x4f   : > { %p403_p11 = por %p402_p8, %p401_p3 }
  0x51   : > { %p404_p0 = pnand %p403_p11, %p397_p10 }
  0x53   : > { %407 = shalt.err (!%p404_p0)
}
  0x54   : > { %287 = dma.vmem_to_hbm [thread:$0]  (%p661_p9), %s600_s18, 128, %s605_s5, %s177_s12  }
  0x55 PF: > { %s202_s28 = sand.u32 1, %s442_s6   ;;  %p662_p6 = scmp.ne.s32.totalorder %s658_s21, 0 }
  0x56   : > { %p663_p13 = scmp.ge.s32.totalorder %s462_s11, 2  ;;  %s203_s3 = scalar_lea.sflag [#allocation4], %s202_s28 }
  0x58   : > { %p294_p2 = pnand %p663_p13, %p662_p6 }
  0x5a   : > { %437 = dma.done.wait (!%p294_p2), %s203_s3, 128  }
  0x5b   : > { %439 = vsyncadd (!%p294_p2), %s203_s3, 4294967168  ;;  %s17_s11 = sadd.s32 1, %s462_s11   ;;  %s664_s6 = smov %s446_s7 }
  0x5c   : > { %p14_p5 = scmp.ge.s32.totalorder %s17_s11, 4   ;;  %s665_s7 = smov %s450_s8 }
  0x5d   : > { %s666_s8 = smov %s535_s20  ;;  %s667_s9 = smov %s458_s10 }
  0x5e   : > { %s668_s10 = smov %s670_s14  ;;  %16 = sbr.rel (!%p14_p5) target bundleno = 6 (0x6), region = 73 }
  0x65   :  { %208 = vsyncpa [#allocation3], 1 }
  0x66   :  { %210 = vsyncpa [#allocation3 + $0x1], 1 }
  0x67   :  { %211 = vsyncpa [#allocation4], 1 }
  0x68   :  { %213 = vsyncpa [#allocation4 + $0x1], 1 }

</bundles_post_ra>
